<compile_context>
chip_gen: v7x
topology: tpu7x:2x2x1
jax: 0.10.0
libtpu: 0.0.40
codegen_flags: <defaults>
</compile_context>

<pallas_src>
import functools

import jax
import jax.numpy as jnp
import numpy as np
from jax.experimental import pallas as pl
from jax.experimental.pallas import tpu as pltpu


def _round_up(x, m):
    return ((x + m - 1) // m) * m


def _tower_kernel(x_ref, w1_ref, b1_ref, w2_ref, out_ref, *, mxu_dtype):
    x = x_ref[...]
    w1 = w1_ref[...]
    if mxu_dtype is not None:
        # In-kernel cast (VPU work hidden under the x DMA): HBM traffic stays at
        # the storage dtype, the MXU gets native bf16 operands, and we avoid the
        # multi-pass f32 matmul decomposition. Accumulation is still f32.
        x = x.astype(mxu_dtype)
        w1 = w1.astype(mxu_dtype)
    # First linear on the MXU, f32 accumulate.
    h = jnp.dot(x, w1, preferred_element_type=jnp.float32)          # [bn, H] f32
    # Bias + tanh epilogue in f32 (v5e has no bf16 VPU/EUP; tanh runs on EUP).
    h = jnp.tanh(h + b1_ref[...])                                   # [bn, H] f32
    # Second linear (H -> 1, no bias): VPU multiply + XLU lane reduce instead of
    # a width-1 MXU matmul (no extra MXU push/drain per tile).
    out_row = jnp.sum(h * w2_ref[...], axis=-1)                     # [bn] f32
    # Lane-dense (1, bn) row => unmasked full-lane vst. The [bn] -> (1, bn)
    # relayout is XLU work with its own VLIW slot; re-check via bundle dump if
    # the epilogue ever becomes the tail after further VPU/EUP trimming.
    out_ref[...] = out_row[None, :].astype(out_ref.dtype)


def tower_forward(x, w1, b1, w2, *, block_n=4096, mxu_dtype=jnp.bfloat16):
    """Pallas forward of Discriminator.tower.

    x:  [N, input_dim]              float32 or bfloat16 (bf16 storage preferred)
    w1: [input_dim, H]              float32 or bfloat16
    b1: [1, H] or [H]               float32
    w2: [1, H] (or [H, 1] / [H])    float32
    mxu_dtype: dtype fed to the MXU. Default bfloat16 (cast in-kernel if the
        inputs are f32; no-op if they are already bf16). Pass None for an exact
        matmul in the input dtype. Accumulation and the tanh epilogue are
        always float32.
    returns [N, 1] float32
    """
    N, D = x.shape
    H = w1.shape[1]

    # Normalize small-parameter layouts (kept f32 for the epilogue).
    b1 = jnp.asarray(b1, jnp.float32).reshape(1, H)
    w2 = jnp.asarray(w2, jnp.float32).reshape(1, H)

    if mxu_dtype is not None:
        mxu_dtype = np.dtype(mxu_dtype)
        if x.dtype == mxu_dtype and w1.dtype == mxu_dtype:
            mxu_dtype = None  # already stored in the MXU dtype; skip the cast

    # Batch tile: multiple of 128 (lane-dense output), big enough to amortize
    # the ~0.35 us per-grid-step overhead at small D, but capped so the batch
    # axis keeps >= 2 tiles for v7x's two TensorCores whenever N allows it.
    cap = max(128, _round_up(int(block_n), 128))
    bn = min(cap, _round_up(pl.cdiv(N, 2), 128))
    if N <= bn:                       # tiny batch: single tile, minimal padding
        bn = _round_up(N, 8)
    num_blocks = pl.cdiv(N, bn)
    n_out = num_blocks * bn           # output slab => stores are never masked

    x_bytes = x.dtype.itemsize
    w_bytes = w1.dtype.itemsize
    cost = pl.CostEstimate(
        flops=int(2 * N * D * H + 2 * N * H),
        transcendentals=int(N * H),
        bytes_accessed=int(N * D * x_bytes + D * H * w_bytes + 2 * H * 4 + N * 4),
    )

    # VMEM budget with lane/sublane padding, double-buffering and headroom;
    # capped at 48 MiB so it stays under v7x's 64 MiB physical VMEM per core.
    lane, sub = 128, 8
    vmem = (2 * _round_up(bn, sub) * _round_up(D, lane) * x_bytes     # x double-buffer
            + 2 * _round_up(D, sub) * _round_up(H, lane) * w_bytes    # W1 double-buffer
            + 4 * sub * _round_up(H, lane) * 4                        # b1, w2
            + 2 * sub * _round_up(bn, lane) * 4                       # out double-buffer
            + 4 * _round_up(bn, sub) * _round_up(H, lane) * 4)        # f32 intermediates
    vmem_limit = int(min(max(2 * vmem, 16 * 1024 * 1024), 48 * 1024 * 1024))

    out = pl.pallas_call(
        functools.partial(_tower_kernel, mxu_dtype=mxu_dtype),
        out_shape=jax.ShapeDtypeStruct((1, n_out), jnp.float32),
        grid_spec=pltpu.PrefetchScalarGridSpec(
            num_scalar_prefetch=0,
            grid=(num_blocks,),
            in_specs=[
                pl.BlockSpec((bn, D), lambda i: (i, 0)),   # x tile (ragged last tile OK)
                pl.BlockSpec((D, H), lambda i: (0, 0)),    # W1 (whole, VMEM-resident)
                pl.BlockSpec((1, H), lambda i: (0, 0)),    # b1 (whole)
                pl.BlockSpec((1, H), lambda i: (0, 0)),    # W2 row (whole)
            ],
            # Lane-dense output slab: one full (1, bn) row per grid step.
            out_specs=pl.BlockSpec((1, bn), lambda i: (0, i)),
        ),
        compiler_params=pltpu.CompilerParams(
            # batch axis is independent -> megacore-shardable on v7x
            dimension_semantics=("parallel",),
            vmem_limit_bytes=vmem_limit,
        ),
        cost_estimate=cost,
    )(x, w1, b1, w2)

    # Tiny slice/reshape on N*4 bytes (negligible vs. the old whole-x pad).
    return out[0, :N].reshape(N, 1)


def init_discriminator_params(ob_dim, ac_dim, hidden_dim, key):
    """Deterministic synthetic init mirroring nn.Linear default (uniform +/- 1/sqrt(fan_in))."""
    input_dim = ob_dim + ac_dim
    k1, k2, k3 = jax.random.split(key, 3)
    lim1 = 1.0 / jnp.sqrt(jnp.float32(input_dim))
    lim2 = 1.0 / jnp.sqrt(jnp.float32(hidden_dim))
    w1 = jax.random.uniform(k1, (input_dim, hidden_dim), jnp.float32, -lim1, lim1)
    b1 = jax.random.uniform(k2, (1, hidden_dim), jnp.float32, -lim1, lim1)
    w2 = jax.random.uniform(k3, (1, hidden_dim), jnp.float32, -lim2, lim2)  # torch Linear(H,1).weight layout
    logZ = jnp.ones((1,), jnp.float32)  # nn.Parameter(torch.ones(1)); not part of tower compute
    return {"w1": w1, "b1": b1, "w2": w2, "logZ": logZ}


def reference_tower(x, params):
    h = jnp.tanh(x @ params["w1"] + params["b1"])
    return h @ params["w2"].T  # == F.linear(h, W2) -> [N, 1]


if __name__ == "__main__":
    ob_dim, ac_dim, hidden_dim = 16, 16, 32

    key = jax.random.PRNGKey(0)
    kx1, kx2, kp = jax.random.split(key, 3)
    params = init_discriminator_params(ob_dim, ac_dim, hidden_dim, kp)

    # 1) tiny batch, like the module's per-(state, action) use: single tile,
    #    exact f32 matmul path.
    x_small = jax.random.normal(kx1, (8, ob_dim + ac_dim), jnp.float32)
    out_small = jax.block_until_ready(
        tower_forward(x_small, params["w1"], params["b1"], params["w2"], mxu_dtype=None))
    ref_small = reference_tower(x_small, params)
    assert out_small.shape == (8, 1)
    assert jnp.allclose(out_small, ref_small, atol=1e-4, rtol=1e-4), "f32 small-batch mismatch"

    # 2) larger ragged batch -> 2-tile cdiv grid (512 + ragged 488, masked edge
    #    reads, NO wrapper pad), exact f32 matmul path.
    x_big = jax.random.normal(kx2, (1000, ob_dim + ac_dim), jnp.float32)
    out_big = jax.block_until_ready(
        tower_forward(x_big, params["w1"], params["b1"], params["w2"], mxu_dtype=None))
    ref_big = reference_tower(x_big, params)
    assert out_big.shape == (1000, 1)
    assert jnp.allclose(out_big, ref_big, atol=1e-4, rtol=1e-4), "f32 big-batch mismatch"

    # 3) default path: f32 in HBM, in-kernel bf16 cast feeding the MXU
    #    (f32 accumulate + f32 epilogue), no wrapper-side astype traffic.
    out_cast = jax.block_until_ready(
        tower_forward(x_big, params["w1"], params["b1"], params["w2"]))
    assert out_cast.shape == (1000, 1)
    assert jnp.allclose(out_cast, ref_big, atol=5e-2, rtol=5e-2), "in-kernel bf16 cast mismatch"

    # 4) bf16 *storage* path: caller keeps x / W1 in bf16 in HBM upstream,
    #    halving the dominant HBM read; kernel uses them directly.
    out_bf16 = jax.block_until_ready(
        tower_forward(x_big.astype(jnp.bfloat16), params["w1"].astype(jnp.bfloat16),
                      params["b1"], params["w2"]))
    assert out_bf16.shape == (1000, 1)
    assert jnp.allclose(out_bf16, ref_big, atol=5e-2, rtol=5e-2), "bf16 storage path mismatch"

    # TODO(synk): update()'s log_sum_exp loss / grad-clip / Adam step and
    # predict_batch_rewards()'s numpy reshape glue are training/host-side and not kernelized here.
    print("KERNEL_OK")
</pallas_src>

<mosaic_0001>
module attributes {stable_mosaic.version = 11 : i64} {
  func.func @_tower_kernel(%arg0: i32, %arg1: memref<8x32xf32, #tpu.memory_space<vmem>>, %arg2: memref<32x32xf32, #tpu.memory_space<vmem>>, %arg3: memref<1x32xf32, #tpu.memory_space<vmem>>, %arg4: memref<1x32xf32, #tpu.memory_space<vmem>>, %arg5: memref<1x8xf32, #tpu.memory_space<vmem>>) attributes {dimension_semantics = [#tpu.dimension_semantics<parallel>], iteration_bounds = array<i64: 1>, scalar_prefetch = 0 : i64, scratch_operands = 0 : i64, tpu.core_type = #tpu.core_type<tc>, window_params = [{transform_indices = @transform_0, window_bounds = array<i64: 8, 32>}, {pipeline_mode = #tpu.pipeline_mode<synchronous>, transform_indices = @transform_1, window_bounds = array<i64: 32, 32>}, {pipeline_mode = #tpu.pipeline_mode<synchronous>, transform_indices = @transform_2, window_bounds = array<i64: 1, 32>}, {pipeline_mode = #tpu.pipeline_mode<synchronous>, transform_indices = @transform_3, window_bounds = array<i64: 1, 32>}, {transform_indices = @transform_4, window_bounds = array<i64: 1, 8>}]} {
    %c0 = arith.constant 0 : index
    %c0_0 = arith.constant 0 : index
    %0 = vector.load %arg1[%c0, %c0_0] : memref<8x32xf32, #tpu.memory_space<vmem>>, vector<8x32xf32>
    %c0_1 = arith.constant 0 : index
    %c0_2 = arith.constant 0 : index
    %1 = vector.load %arg2[%c0_1, %c0_2] : memref<32x32xf32, #tpu.memory_space<vmem>>, vector<32x32xf32>
    %cst = arith.constant dense<0.000000e+00> : vector<8x32xf32>
    %2 = tpu.matmul %0, %1, %cst {dimension_numbers = #tpu.dot_dimension_numbers<[1], [0], [0], [1], [0, 0, 1, 1], [], []>} : vector<8x32xf32>, vector<32x32xf32>, vector<8x32xf32> -> vector<8x32xf32>
    %c0_3 = arith.constant 0 : index
    %c0_4 = arith.constant 0 : index
    %3 = vector.load %arg3[%c0_3, %c0_4] : memref<1x32xf32, #tpu.memory_space<vmem>>, vector<1x32xf32>
    %4 = vector.broadcast %3 : vector<1x32xf32> to vector<8x32xf32>
    %5 = arith.addf %2, %4 : vector<8x32xf32>
    %6 = math.tanh %5 : vector<8x32xf32>
    %c0_5 = arith.constant 0 : index
    %c0_6 = arith.constant 0 : index
    %7 = vector.load %arg4[%c0_5, %c0_6] : memref<1x32xf32, #tpu.memory_space<vmem>>, vector<1x32xf32>
    %8 = vector.broadcast %7 : vector<1x32xf32> to vector<8x32xf32>
    %9 = arith.mulf %6, %8 : vector<8x32xf32>
    %cst_7 = arith.constant dense<0.000000e+00> : vector<8xf32>
    %10 = vector.multi_reduction <add>, %9, %cst_7 [1] : vector<8x32xf32> to vector<8xf32>
    %11 = vector.shape_cast %10 : vector<8xf32> to vector<1x8xf32>
    %c0_8 = arith.constant 0 : index
    %c0_9 = arith.constant 0 : index
    %12 = vector.load %arg5[%c0_8, %c0_9] : memref<1x8xf32, #tpu.memory_space<vmem>>, vector<1x8xf32>
    tpu.vector_store %arg5[%c0_8, %c0_9], %11 {strides = array<i32>} : memref<1x8xf32, #tpu.memory_space<vmem>>, vector<1x8xf32>,
    return
  }
  func.func @transform_0(%arg0: i32) -> (i32, i32) {
    %c0_i32 = arith.constant 0 : i32
    %c0_i32_0 = arith.constant 0 : i32
    return %arg0, %c0_i32 : i32, i32
  }
  func.func @transform_1(%arg0: i32) -> (i32, i32) {
    %c0_i32 = arith.constant 0 : i32
    %c0_i32_0 = arith.constant 0 : i32
    %c0_i32_1 = arith.constant 0 : i32
    return %c0_i32, %c0_i32_0 : i32, i32
  }
  func.func @transform_2(%arg0: i32) -> (i32, i32) {
    %c0_i32 = arith.constant 0 : i32
    %c0_i32_0 = arith.constant 0 : i32
    %c0_i32_1 = arith.constant 0 : i32
    return %c0_i32, %c0_i32_0 : i32, i32
  }
  func.func @transform_3(%arg0: i32) -> (i32, i32) {
    %c0_i32 = arith.constant 0 : i32
    %c0_i32_0 = arith.constant 0 : i32
    %c0_i32_1 = arith.constant 0 : i32
    return %c0_i32, %c0_i32_0 : i32, i32
  }
  func.func @transform_4(%arg0: i32) -> (i32, i32) {
    %c0_i32 = arith.constant 0 : i32
    %c0_i32_0 = arith.constant 0 : i32
    return %c0_i32, %arg0 : i32, i32
  }
}

</mosaic_0001>

<bundles_post_ra>
// kernel: tpu_custom_call.1
= control target key start
LH: loop header
LB: loop body
LE: loop exit
PB: predicated region body
PF: predicated region fallthrough
CT: control target
= control target key end

     0   :  { %9 = vsyncpa [#allocation3], 0  ;;  %s357_s0 = inlined_call_operand.hbm [shape: f32[8,32], index: 0, kind: input, shape index: {}]   ;;  %s358_s1 = inlined_call_operand.hbm [shape: f32[32,32], index: 1, kind: input, shape index: {}]   ;;  %s359_s2 = inlined_call_operand.vmem [shape: f32[1,32], index: 2, kind: input, shape index: {}]   ;;  %s360_s3 = inlined_call_operand.vmem [shape: f32[1,32], index: 3, kind: input, shape index: {}]   ;;  %s361_s4 = inlined_call_operand.hbm [shape: f32[1,8], index: 4, kind: output, shape index: {}]  }
   0x1   :  { %10 = vsyncpa [#allocation6], 0 }
   0x2   :  { %11 = vsyncpa [#allocation4], 0  ;;  %s275_s15 = smov [#allocation2]   ;;  %s276_s17 = smov [#allocation5]  }
   0x3   :  { %s18_s16 = sshll.u32 %s275_s15, 4  ;;  %s27_s18 = sshll.u32 %s276_s17, 4  ;;  %s19_s16 = int_to_ptr.vmem [resolvable:$true] %s18_s16  ;;  %s308_s18 = int_to_ptr.vmem [resolvable:$true] %s27_s18 }
   0x4   :  { %s203_s21 = scalar_lea.hbm %s357_s0, 128 }
   0x5   :  { %p204_p0 = scmp.ne.s32.totalorder %s357_s0, %s203_s21  ;;  %p207_p1 = scmp.lt.u32.totalorder %s203_s21, %s357_s0 }
   0x7   :  { %p209_p2 = pnand %p207_p1, %p204_p0 }
   0x9   :  { %212 = shalt.err (!%p209_p2)
}
   0xa   :  { %s213_s26 = scalar_lea.vmem %s19_s16, 128  ;;  %p218_p4 = scmp.lt.s32.totalorder %s19_s16, %s19_s16 }
   0xb   :  { %p214_p3 = scmp.ne.s32.totalorder %s19_s16, %s213_s26  ;;  %p219_p5 = scmp.lt.s32.totalorder %s213_s26, %s213_s26 }
   0xd   :  { %p220_p6 = por %p219_p5, %p218_p4 }
   0xf   :  { %p221_p7 = pnand %p220_p6, %p214_p3 }
  0x11   :  { %224 = shalt.err (!%p221_p7)
}
  0x12   :  { %21 = dma.hbm_to_vmem [thread:$0]  %s357_s0, 128, %s19_s16, [#allocation3]  }
  0x13   :  { %s225_s5 = scalar_lea.hbm %s358_s1, 512 }
  0x14   :  { %p226_p8 = scmp.ne.s32.totalorder %s358_s1, %s225_s5  ;;  %p229_p9 = scmp.lt.u32.totalorder %s225_s5, %s358_s1 }
  0x16   :  { %p231_p10 = pnand %p229_p9, %p226_p8 }
  0x18   :  { %234 = shalt.err (!%p231_p10)
}
  0x19   :  { %s235_s10 = scalar_lea.vmem %s308_s18, 512  ;;  %p240_p12 = scmp.lt.s32.totalorder %s308_s18, %s308_s18 }
  0x1a   :  { %p236_p11 = scmp.ne.s32.totalorder %s308_s18, %s235_s10  ;;  %p241_p13 = scmp.lt.s32.totalorder %s235_s10, %s235_s10 }
  0x1c   :  { %p242_p0 = por %p241_p13, %p240_p12 }
  0x1e   :  { %p243_p1 = pnand %p242_p0, %p236_p11 }
  0x20   :  { %246 = shalt.err (!%p243_p1)
}
  0x21   :  { %s277_s0 = smov 128   ;;  %s278_s11 = smov 8  }
  0x22   :  { %33 = dma.hbm_to_vmem [thread:$0]  %s358_s1, 512, %s308_s18, [#allocation6], %s277_s0, %s277_s0, %s278_s11  }
  0x23   :  { %269 = dma.done.wait [#allocation3], 128  }
  0x24   :  { %270 = vsyncadd [#allocation3], 4294967168 }
  0x25   :  { %271 = dma.done.wait [#allocation6], 512  }
  0x26   :  { %272 = vsyncadd [#allocation6], 4294966784  ;;  %v279_v0 = vmov 0.0|0.0   ;;  %vm280_vm0 = vmmov 0   ;;  %v281_v1 = vmov 0.0   ;;  %v45_v2 = vld [vmem:[#allocation5] sm:$0xff]  ;;  %v143_v17 = vlaneseq }
  0x27   :  { %187 = vmatprep.subr.bf16.mxu0 %v279_v0  ;;  %184 = vmatprep.mubr.msk.f32.mxu0 %vm280_vm0, %v281_v1  ;;  %v46_v3 = vld [vmem:[#allocation5 + $0x8] sm:$0xff]  ;;  %v47_v4 = vld [vmem:[#allocation5 + $0x10] sm:$0xff]  ;;  %v48_v6 = vld [vmem:[#allocation5 + $0x18] sm:$0xff]  ;;  %vm56_vm1 = vcmask 261120   ;;  %s282_s17 = smov [#allocation7]   ;;  %vm150_vm2 = vcmask 57344  }
  0x28   :  { %v188_v5 = vpack.c.bf16 %v46_v3, %v45_v2  ;;  %v191_v7 = vpack.c.bf16 %v48_v6, %v47_v4  ;;  %v44_v8 = vld [vmem:[#allocation2] sm:$0xff]  ;;  %v144_v18 = vand.u32 127, %v143_v17  ;;  %v146_v19 = vshrl.u32 %v143_v17, 7  ;;  %s158_s18 = sshll.u32 %s282_s17, 4  ;;  %s159_s18 = int_to_ptr.vmem [resolvable:$true] %s158_s18 }
  0x29   :  { %v168_v9 = vld [vmem:[%s359_s2] ss:$0 sm:$0xff]  ;;  %s247_s2 = scalar_lea.vmem %s159_s18, 16  ;;  %s251_s19 = scalar_lea.vmem %s159_s18, 32 }
  0x2a   :  { %189 = vmatpush3.bf16.msra.mxu0 %v188_v5  ;;  %v170_v13 = vld [vmem:[%s360_s3] ss:$0 sm:$0xff]  ;;  %v147_v20 = vsub.s32 %v144_v18, %v146_v19  ;;  %p248_p2 = scmp.ne.s32.totalorder %s159_s18, %s247_s2  ;;  %p252_p3 = scmp.lt.s32.totalorder %s159_s18, %s159_s18 }
  0x2b   :  { %190 = vmatprep.subr.bf16.mxu0 %v279_v0  ;;  %p253_p4 = scmp.lt.s32.totalorder %s251_s19, %s247_s2 }
  0x2d   :  { %p254_p5 = por %p253_p4, %p252_p3 }
  0x2e   :  { %192 = vmatpush3.bf16.msra.mxu0 %v191_v7 }
  0x2f   :  { %p255_p6 = pnand %p254_p5, %p248_p2 }
  0x31   :  { %185 = vmatmul.mubr.msk.f32.vlgmr.msra.gmra.mrb[0].mxu0 %vm56_vm1, %v44_v8 }
 0x104   :  { %v126_v10 = vpop.f32.mrb[0].mxu0 }
 0x105   :  { %v127_v11 = vadd.f32 %v168_v9, %v126_v10  ;;  %v186_v12 = vpop.f32.mrb[1].mxu0 }
 0x107   :  { %201 = vtanh.f32 %v127_v11 }
 0x111   :  { %v202_v14 = vpop.eup %201 }
 0x112   :  { %v138_v15 = vmul.f32 %v202_v14, %v170_v13 }
 0x114   :  { %v139_v16 = vsel %vm56_vm1, %v138_v15, 0.0 }
 0x115   :  { %140 = vadd.xlane.f32.xlu0 %v139_v16 }
 0x1a2   :  { %v141_v21 = vpop.xlane.xlu0 %140 }
 0x1a3   :  { %v148_v22 = vrot.slane %v141_v21, %v147_v20 }
 0x1a5   :  { %151 = vst.msk [vmem:[#allocation7] sm:$0x1] %vm150_vm2, %v148_v22 }
 0x1a6   :  { %258 = shalt.err (!%p255_p6)
}
 0x1a7   :  { %s259_s21 = scalar_lea.hbm %s361_s4, 16 }
 0x1a8   :  { %p260_p7 = scmp.ne.s32.totalorder %s361_s4, %s259_s21  ;;  %p263_p8 = scmp.lt.u32.totalorder %s259_s21, %s361_s4 }
 0x1aa   :  { %p265_p9 = pnand %p263_p8, %p260_p7 }
 0x1ac   :  { %268 = shalt.err (!%p265_p9)
}
 0x1ad   :  { %161 = dma.vmem_to_hbm [thread:$0]  %s159_s18, 16, %s361_s4, [#allocation4]  }
 0x1ae   :  { %273 = dma.done.wait [#allocation4], 16  }
 0x1af   :  { %274 = vsyncadd [#allocation4], 4294967280 }
 0x1b0   :  { %165 = vsyncpa [#allocation3], 1 }
 0x1b1   :  { %166 = vsyncpa [#allocation6], 1 }
 0x1b2   :  { %167 = vsyncpa [#allocation4], 1 }

</bundles_post_ra>
